<compile_context>
chip_gen: v6e
topology: v6e:2x2x1
jax: 0.10.0
libtpu: 0.0.40
codegen_flags: <defaults>
</compile_context>

<pallas_src>
import functools

import jax
import jax.numpy as jnp
from jax.experimental import pallas as pl
from jax.experimental.pallas import tpu as pltpu

_SLAB_COLS = 128     # lane width of the packed weight slab
_MAX_TILE = 16384    # max batch rows per grid step (16K * 16 * 4B = 1 MiB)


# ----------------------------------------------------------------------------
# Kernel
# ----------------------------------------------------------------------------
def _ae_kernel(layer_meta, x_ref, slab_ref, out_ref):
    """Transposed layout: activations are [features, batch_tile].

    layer_meta: tuple of (slab_row, in_dim, out_dim, apply_sigmoid).
    slab layout per layer (rows slab_row .. slab_row+out_dim):
      cols [0, in_dim)            -> W^T   [out_dim, in_dim]
      col  in_dim                 -> bias  [out_dim, 1]
    """
    h = x_ref[...]
    if h.dtype != jnp.float32:
        h = h.astype(jnp.float32)
    for (row, in_d, out_d, act) in layer_meta:
        w_t = slab_ref[pl.ds(row, out_d), pl.ds(0, in_d)]      # [out, in]
        b_c = slab_ref[pl.ds(row, out_d), pl.ds(in_d, 1)]      # [out, 1]
        h = jnp.dot(w_t, h, preferred_element_type=jnp.float32) + b_c
        if act:
            # exp -> EUP; exact reciprocal keeps parity with jax.nn.sigmoid.
            h = pl.reciprocal(1.0 + jnp.exp(-h), approx=False)
    out_ref[...] = h.astype(out_ref.dtype)


# ----------------------------------------------------------------------------
# Wrapper helpers
# ----------------------------------------------------------------------------
def _pack_slab(layers):
    """Pack every (W [in,out], b [1,out]) into one [rows, 128] f32 slab.

    Per layer: an 8-aligned row block holding W^T in cols [0,in) and the bias
    as a column at col `in`.  Returns (slab, [(row, in, out), ...])."""
    blocks, meta, r = [], [], 0
    for (w, b) in layers:
        in_d, out_d = int(w.shape[0]), int(w.shape[1])
        assert in_d + 1 <= _SLAB_COLS, "layer input dim too wide for slab"
        blk_rows = -(-out_d // 8) * 8                      # 8-aligned rows
        blk = jnp.zeros((blk_rows, _SLAB_COLS), jnp.float32)
        blk = blk.at[:out_d, :in_d].set(jnp.asarray(w, jnp.float32).T)
        blk = blk.at[:out_d, in_d].set(jnp.asarray(b, jnp.float32).reshape(-1))
        blocks.append(blk)
        meta.append((r, in_d, out_d))
        r += blk_rows
    return jnp.concatenate(blocks, axis=0), meta


def _tensorcores_per_chip():
    """v7x is the only generation with 2 TensorCores per chip."""
    try:
        kind = jax.devices()[0].device_kind.lower()
        if "v7" in kind or "7x" in kind:
            return 2
    except Exception:
        pass
    return 1


def _choose_batch_tile(B, n_tc):
    """Batch tile (lane axis): multiple of 128, capped at _MAX_TILE.
    Single grid step on 1-TC chips; 2 'parallel' steps on v7x when each core
    still gets >= 1024 rows."""
    b128 = -(-B // 128) * 128
    if n_tc >= 2 and b128 >= 2048:
        t = -(-(b128 // 128) // 2) * 128          # ~half, multiple of 128
        return min(t, _MAX_TILE)
    return min(b128, _MAX_TILE)


# ----------------------------------------------------------------------------
# Forward
# ----------------------------------------------------------------------------
def ae_forward(x, layers, act_flags, *, batch_tile=None):
    """x: [B, data_dim]; layers: list of (W [in,out], b [1,out]) for the full
    encoder+decoder chain; act_flags: list[bool], sigmoid after layer l."""
    B, D = x.shape
    out_dim = int(layers[-1][0].shape[1])

    if batch_tile is None:
        batch_tile = _choose_batch_tile(B, _tensorcores_per_chip())
    B_pad = -(-B // batch_tile) * batch_tile

    # Pad batch (discarded rows), then transpose so batch rides the lane axis.
    x_p = x if B_pad == B else jnp.pad(x, ((0, B_pad - B), (0, 0)))
    x_t = x_p.T                                   # [D, B_pad]

    slab, meta = _pack_slab(layers)
    layer_meta = tuple((r, i, o, bool(a))
                       for (r, i, o), a in zip(meta, act_flags))
    kernel = functools.partial(_ae_kernel, layer_meta)

    # Advisory cost estimate: 4 tiny matmuls + sigmoids, memory/overhead-bound.
    flops = 2 * B_pad * sum(int(w.shape[0]) * int(w.shape[1])
                            for w, _ in layers)
    transcendentals = B_pad * sum(int(w.shape[1])
                                  for (w, _), a in zip(layers, act_flags) if a)
    bytes_accessed = B_pad * (D + out_dim) * 4 + int(slab.size) * 4
    cost = pl.CostEstimate(flops=flops, transcendentals=transcendentals,
                           bytes_accessed=bytes_accessed)

    out_t = pl.pallas_call(
        kernel,
        out_shape=jax.ShapeDtypeStruct((out_dim, B_pad), x.dtype),
        grid=(B_pad // batch_tile,),
        in_specs=[
            pl.BlockSpec((D, batch_tile), lambda i: (0, i)),   # x^T batch tile
            pl.BlockSpec(slab.shape, lambda i: (0, 0)),        # resident slab
        ],
        out_specs=pl.BlockSpec((out_dim, batch_tile), lambda i: (0, i)),
        compiler_params=pltpu.CompilerParams(
            dimension_semantics=("parallel",)),
        cost_estimate=cost,
    )(x_t, slab)

    out = out_t.T                                  # [B_pad, out_dim]
    return out if B_pad == B else out[:B]


# ----------------------------------------------------------------------------
# Parameter construction (matches PyTorch nn.Linear defaults) + reference
# ----------------------------------------------------------------------------
def _init_linear(key, in_dim, out_dim):
    # PyTorch nn.Linear default init: U(-1/sqrt(in), 1/sqrt(in)) for W and b.
    kw, kb = jax.random.split(key)
    bound = 1.0 / jnp.sqrt(jnp.float32(in_dim))
    w = jax.random.uniform(kw, (in_dim, out_dim), jnp.float32, -bound, bound)
    b = jax.random.uniform(kb, (1, out_dim), jnp.float32, -bound, bound)
    return w, b


def _fnn_dims(in_dim, out_dim, depth, width):
    """Layer (in, out) sizes of one FNN, plus activation flags."""
    if depth > 1:
        dims = [(in_dim, width)]
        dims += [(width, width)] * (depth - 2)
        dims += [(width, out_dim)]
        acts = [True] * (depth - 1) + [False]
    else:
        dims = [(in_dim, out_dim)]
        acts = [False]
    return dims, acts


def build_ae_params(key, data_dim, latent_dim, depth, width):
    enc_dims, enc_acts = _fnn_dims(data_dim, latent_dim, depth, width)
    dec_dims, dec_acts = _fnn_dims(latent_dim, data_dim, depth, width)
    dims = enc_dims + dec_dims
    acts = enc_acts + dec_acts
    keys = jax.random.split(key, len(dims))
    layers = [_init_linear(k, i, o) for k, (i, o) in zip(keys, dims)]
    return layers, acts


def ae_reference(x, layers, acts):
    h = x.astype(jnp.float32)
    for (w, b), a in zip(layers, acts):
        h = h @ w + b
        if a:
            h = jax.nn.sigmoid(h)
    return h.astype(x.dtype)


if __name__ == "__main__":
    # Config: AE(data_dim=16, latent_dim=4, depth=2, width=32, 'sigmoid')
    data_dim, latent_dim, depth, width = 16, 4, 2, 32
    batch = 512

    key = jax.random.PRNGKey(0)
    kx, kp = jax.random.split(key)
    x = jax.random.normal(kx, (batch, data_dim), jnp.float32)

    layers, acts = build_ae_params(kp, data_dim, latent_dim, depth, width)

    out = jax.block_until_ready(ae_forward(x, layers, acts))
    ref = ae_reference(x, layers, acts)
    assert out.shape == (batch, data_dim)
    assert jnp.allclose(out, ref, atol=1e-5, rtol=1e-5), (
        float(jnp.max(jnp.abs(out - ref))))

    # Also exercise a non-128-divisible batch (padding + slice-back path).
    x_small = x[:10]
    out_small = jax.block_until_ready(ae_forward(x_small, layers, acts))
    ref_small = ae_reference(x_small, layers, acts)
    assert out_small.shape == (10, data_dim)
    assert jnp.allclose(out_small, ref_small, atol=1e-5, rtol=1e-5)

    print("KERNEL_OK")
</pallas_src>

<mosaic_0001>
module attributes {stable_mosaic.version = 11 : i64} {
  func.func @_ae_kernel(%arg0: i32, %arg1: memref<16x512xf32, #tpu.memory_space<vmem>>, %arg2: memref<88x128xf32, #tpu.memory_space<vmem>>, %arg3: memref<16x512xf32, #tpu.memory_space<vmem>>) attributes {dimension_semantics = [#tpu.dimension_semantics<parallel>], iteration_bounds = array<i64: 1>, scalar_prefetch = 0 : i64, scratch_operands = 0 : i64, tpu.core_type = #tpu.core_type<tc>, window_params = [{transform_indices = @transform_0, window_bounds = array<i64: 16, 512>}, {pipeline_mode = #tpu.pipeline_mode<synchronous>, transform_indices = @transform_1, window_bounds = array<i64: 88, 128>}, {transform_indices = @transform_2, window_bounds = array<i64: 16, 512>}]} {
    %c0 = arith.constant 0 : index
    %c0_0 = arith.constant 0 : index
    %0 = vector.load %arg1[%c0, %c0_0] : memref<16x512xf32, #tpu.memory_space<vmem>>, vector<16x512xf32>
    %c0_1 = arith.constant 0 : index
    %c0_2 = arith.constant 0 : index
    %1 = vector.load %arg2[%c0_1, %c0_2] : memref<88x128xf32, #tpu.memory_space<vmem>>, vector<32x16xf32>
    %c0_3 = arith.constant 0 : index
    %c16 = arith.constant 16 : index
    %2 = vector.load %arg2[%c0_3, %c16] : memref<88x128xf32, #tpu.memory_space<vmem>>, vector<32x1xf32>
    %cst = arith.constant dense<0.000000e+00> : vector<32x512xf32>
    %3 = tpu.matmul %1, %0, %cst {dimension_numbers = #tpu.dot_dimension_numbers<[1], [0], [0], [1], [0, 0, 1, 1], [], []>} : vector<32x16xf32>, vector<16x512xf32>, vector<32x512xf32> -> vector<32x512xf32>
    %4 = vector.broadcast %2 : vector<32x1xf32> to vector<32x512xf32>
    %5 = arith.addf %3, %4 : vector<32x512xf32>
    %cst_4 = arith.constant 0.000000e+00 : f32
    %6 = vector.broadcast %cst_4 : f32 to vector<32x512xf32>
    %7 = arith.subf %6, %5 : vector<32x512xf32>
    %8 = math.exp %7 : vector<32x512xf32>
    %cst_5 = arith.constant 1.000000e+00 : f32
    %9 = vector.broadcast %cst_5 : f32 to vector<32x512xf32>
    %10 = arith.addf %9, %8 : vector<32x512xf32>
    %11 = tpu.reciprocal %10 : vector<32x512xf32> -> vector<32x512xf32>
    %c32 = arith.constant 32 : index
    %c0_6 = arith.constant 0 : index
    %12 = vector.load %arg2[%c32, %c0_6] : memref<88x128xf32, #tpu.memory_space<vmem>>, vector<4x32xf32>
    %c32_7 = arith.constant 32 : index
    %c32_8 = arith.constant 32 : index
    %13 = vector.load %arg2[%c32_7, %c32_8] : memref<88x128xf32, #tpu.memory_space<vmem>>, vector<4x1xf32>
    %cst_9 = arith.constant dense<0.000000e+00> : vector<4x512xf32>
    %14 = tpu.matmul %12, %11, %cst_9 {dimension_numbers = #tpu.dot_dimension_numbers<[1], [0], [0], [1], [0, 0, 1, 1], [], []>} : vector<4x32xf32>, vector<32x512xf32>, vector<4x512xf32> -> vector<4x512xf32>
    %15 = vector.broadcast %13 : vector<4x1xf32> to vector<4x512xf32>
    %16 = arith.addf %14, %15 : vector<4x512xf32>
    %c40 = arith.constant 40 : index
    %c0_10 = arith.constant 0 : index
    %17 = vector.load %arg2[%c40, %c0_10] : memref<88x128xf32, #tpu.memory_space<vmem>>, vector<32x4xf32>
    %c40_11 = arith.constant 40 : index
    %c4 = arith.constant 4 : index
    %18 = vector.load %arg2[%c40_11, %c4] : memref<88x128xf32, #tpu.memory_space<vmem>>, vector<32x1xf32>
    %cst_12 = arith.constant dense<0.000000e+00> : vector<32x512xf32>
    %19 = tpu.matmul %17, %16, %cst_12 {dimension_numbers = #tpu.dot_dimension_numbers<[1], [0], [0], [1], [0, 0, 1, 1], [], []>} : vector<32x4xf32>, vector<4x512xf32>, vector<32x512xf32> -> vector<32x512xf32>
    %20 = vector.broadcast %18 : vector<32x1xf32> to vector<32x512xf32>
    %21 = arith.addf %19, %20 : vector<32x512xf32>
    %cst_13 = arith.constant 0.000000e+00 : f32
    %22 = vector.broadcast %cst_13 : f32 to vector<32x512xf32>
    %23 = arith.subf %22, %21 : vector<32x512xf32>
    %24 = math.exp %23 : vector<32x512xf32>
    %cst_14 = arith.constant 1.000000e+00 : f32
    %25 = vector.broadcast %cst_14 : f32 to vector<32x512xf32>
    %26 = arith.addf %25, %24 : vector<32x512xf32>
    %27 = tpu.reciprocal %26 : vector<32x512xf32> -> vector<32x512xf32>
    %c72 = arith.constant 72 : index
    %c0_15 = arith.constant 0 : index
    %28 = vector.load %arg2[%c72, %c0_15] : memref<88x128xf32, #tpu.memory_space<vmem>>, vector<16x32xf32>
    %c72_16 = arith.constant 72 : index
    %c32_17 = arith.constant 32 : index
    %29 = vector.load %arg2[%c72_16, %c32_17] : memref<88x128xf32, #tpu.memory_space<vmem>>, vector<16x1xf32>
    %cst_18 = arith.constant dense<0.000000e+00> : vector<16x512xf32>
    %30 = tpu.matmul %28, %27, %cst_18 {dimension_numbers = #tpu.dot_dimension_numbers<[1], [0], [0], [1], [0, 0, 1, 1], [], []>} : vector<16x32xf32>, vector<32x512xf32>, vector<16x512xf32> -> vector<16x512xf32>
    %31 = vector.broadcast %29 : vector<16x1xf32> to vector<16x512xf32>
    %32 = arith.addf %30, %31 : vector<16x512xf32>
    %c0_19 = arith.constant 0 : index
    %c0_20 = arith.constant 0 : index
    %33 = vector.load %arg3[%c0_19, %c0_20] : memref<16x512xf32, #tpu.memory_space<vmem>>, vector<16x512xf32>
    tpu.vector_store %arg3[%c0_19, %c0_20], %32 {strides = array<i32>} : memref<16x512xf32, #tpu.memory_space<vmem>>, vector<16x512xf32>,
    return
  }
  func.func @transform_0(%arg0: i32) -> (i32, i32) {
    %c0_i32 = arith.constant 0 : i32
    %c0_i32_0 = arith.constant 0 : i32
    return %c0_i32, %arg0 : i32, i32
  }
  func.func @transform_1(%arg0: i32) -> (i32, i32) {
    %c0_i32 = arith.constant 0 : i32
    %c0_i32_0 = arith.constant 0 : i32
    %c0_i32_1 = arith.constant 0 : i32
    return %c0_i32, %c0_i32_0 : i32, i32
  }
  func.func @transform_2(%arg0: i32) -> (i32, i32) {
    %c0_i32 = arith.constant 0 : i32
    %c0_i32_0 = arith.constant 0 : i32
    return %c0_i32, %arg0 : i32, i32
  }
}

</mosaic_0001>

<bundles_post_ra>
// kernel: tpu_custom_call.1
= control target key start
LH: loop header
LB: loop body
LE: loop exit
PB: predicated region body
PF: predicated region fallthrough
CT: control target
= control target key end

     0   :  { %7 = vsyncpa [#allocation3], 0  ;;  %s1337_s0 = inlined_call_operand.hbm [shape: f32[16,512], index: 0, kind: input, shape index: {}]   ;;  %s1338_s1 = inlined_call_operand.hbm [shape: f32[88,128], index: 1, kind: input, shape index: {}]   ;;  %s1339_s2 = inlined_call_operand.hbm [shape: f32[16,512], index: 2, kind: output, shape index: {}]  }
   0x1   :  { %8 = vsyncpa [#allocation6], 0 }
   0x2   :  { %9 = vsyncpa [#allocation4], 0  ;;  %s1228_s9 = smov [#allocation2]  }
   0x3   :  { %s15_s10 = sshll.u32 %s1228_s9, 4  ;;  %s16_s10 = int_to_ptr.vmem [resolvable:$true] %s15_s10 }
   0x4   :  { %s1170_s11 = scalar_lea.vmem %s16_s10, 1024  ;;  %p1175_p1 = scmp.lt.s32.totalorder %s16_s10, %s16_s10 }
   0x5   :  { %p1171_p0 = scmp.ne.s32.totalorder %s16_s10, %s1170_s11  ;;  %p1176_p2 = scmp.lt.s32.totalorder %s1170_s11, %s1170_s11 }
   0x7   :  { %p1177_p3 = por %p1176_p2, %p1175_p1 }
   0x9   :  { %p1178_p4 = pnand %p1177_p3, %p1171_p0 }
   0xb   :  { %1181 = shalt.err (!%p1178_p4)
}
   0xc   :  { %s1229_s12 = smov 512   ;;  %s1230_s13 = smov 32  }
   0xd   :  { %21 = dma.hbm_to_vmem [thread:$0]  %s1337_s0, 1024, %s16_s10, [#allocation3], %s1229_s12, %s1229_s12, %s1230_s13  }
   0xe   :  { %s1231_s16 = smov [#allocation5]  }
   0xf   :  { %s27_s17 = sshll.u32 %s1231_s16, 4  ;;  %s28_s17 = int_to_ptr.vmem [resolvable:$true] %s27_s17 }
  0x10   :  { %s1190_s18 = scalar_lea.vmem %s28_s17, 1408  ;;  %p1195_p6 = scmp.lt.s32.totalorder %s28_s17, %s28_s17 }
  0x11   :  { %p1191_p5 = scmp.ne.s32.totalorder %s28_s17, %s1190_s18  ;;  %p1196_p7 = scmp.lt.s32.totalorder %s1190_s18, %s1190_s18 }
  0x13   :  { %p1197_p8 = por %p1196_p7, %p1195_p6 }
  0x15   :  { %p1198_p9 = pnand %p1197_p8, %p1191_p5 }
  0x17   :  { %1201 = shalt.err (!%p1198_p9)
}
  0x18   :  { %s1232_s19 = smov 128   ;;  %s1233_s20 = smov 8  }
  0x19   :  { %33 = dma.hbm_to_vmem [thread:$0]  %s1338_s1, 1408, %s28_s17, [#allocation6], %s1232_s19, %s1232_s19, %s1233_s20  }
  0x1a   :  { %1222 = dma.done.wait [#allocation3], 1024  }
  0x1b   :  { %1223 = vsyncadd [#allocation3], 4294966272 }
  0x1c   :  { %1224 = dma.done.wait [#allocation6], 1408  }
  0x1d   :  { %1225 = vsyncadd [#allocation6], 4294965888  ;;  %v1234_v0 = vmov 0.0   ;;  %v1235_v1 = vmov 16   ;;  %v45_v2 = vld [vmem:[#allocation2 + $0x28] sm:$0xff]  ;;  %v47_v3 = vld [vmem:[#allocation2 + $0x38] sm:$0xff] }
  0x1e   :  { %145 = vmatprep.mubr.f32.mxu0 %v1234_v0  ;;  %234 = vmatprep.mubr.f32.mxu1 %v1234_v0  ;;  %v44_v4 = vld [vmem:[#allocation2 + $0x20] sm:$0xff]  ;;  %v46_v5 = vld [vmem:[#allocation2 + $0x30] sm:$0xff]  ;;  %v41_v6 = vld [vmem:[#allocation2 + $0x8] sm:$0xff]  ;;  %vm72_vm0 = vcmask 130048   ;;  %v1236_v15 = vmov 32   ;;  %vm345_vm1 = vcmask 261120  }
  0x1f   :  { %1028 = vset.pattern.permute.xlu1 %v1235_v1  ;;  %1027 = vset.pattern.permute.xlu0 %v1235_v1  ;;  %v43_v7 = vld [vmem:[#allocation2 + $0x18] sm:$0xff]  ;;  %v40_v8 = vld [vmem:[#allocation2] sm:$0xff]  ;;  %v42_v9 = vld [vmem:[#allocation2 + $0x10] sm:$0xff]  ;;  %vm523_vm2 = vcmask 1043456   ;;  %vm514_vm3 = vcmask 31744   ;;  %s1238_s0 = smov [#allocation7]  }
  0x20   :  { %109 = vmatprep.subr.mxu0 %v45_v2  ;;  %198 = vmatprep.subr.mxu1 %v47_v3  ;;  %v48_v10 = vld [vmem:[#allocation5] sm:$0xff]  ;;  %v49_v11 = vld [vmem:[#allocation5 + $0x8] sm:$0xff]  ;;  %v51_v12 = vld [vmem:[#allocation5 + $0x18] sm:$0xff]  ;;  %s977_s1 = sshll.u32 %s1238_s0, 4  ;;  %s978_s1 = int_to_ptr.vmem [resolvable:$true] %s977_s1 }
  0x21   :  { %110 = vmatpush1.msra.mxu0 %v44_v4  ;;  %199 = vmatpush1.msra.mxu1 %v46_v5  ;;  %v50_v13 = vld [vmem:[#allocation5 + $0x10] sm:$0xff]  ;;  %v1281_v14 = vld [vmem:[#allocation5 + $0x20] sm:$0xf]  ;;  %s1202_s23 = scalar_lea.vmem %s978_s1, 1024  ;;  %p1207_p11 = scmp.lt.s32.totalorder %s978_s1, %s978_s1 }
  0x22   :  { %111 = vmatprep.subr.mxu0 %v41_v6  ;;  %200 = vmatprep.subr.mxu1 %v43_v7  ;;  %p1203_p10 = scmp.ne.s32.totalorder %s978_s1, %s1202_s23  ;;  %p1208_p12 = scmp.lt.s32.totalorder %s1202_s23, %s1202_s23 }
  0x23   :  { %112 = vmatpush1.msra.mxu0 %v40_v8  ;;  %201 = vmatpush1.msra.mxu1 %v42_v9 }
  0x24   :  { %990 = vmatmul.mubr.msk.f32.vlgmr.msra.gmra.mxu0 %vm72_vm0, %v48_v10  ;;  %994 = vmatmul.mubr.msk.f32.vlgmr.msra.gmra.mxu1 %vm72_vm0, %v48_v10  ;;  %p1209_p13 = por %p1208_p12, %p1207_p11 }
  0x25   :  { %151 = vmatprep.mubr.f32.mxu0 %v1234_v0  ;;  %240 = vmatprep.mubr.f32.mxu1 %v1234_v0 }
  0x26   :  { %59 = vperm.xlu1 %1028, %v49_v11   ;;  %69 = vperm.xlu0 %1027, %v51_v12   ;;  %p1210_p0 = pnand %p1209_p13, %p1203_p10 }
  0x28   :  { %991 = vmatmul.mubr.msk.f32.gmra.mxu0 %vm72_vm0, %v49_v11  ;;  %995 = vmatmul.mubr.msk.f32.gmra.mxu1 %vm72_vm0, %v49_v11 }
  0x29   :  { %157 = vmatprep.mubr.f32.mxu0 %v1234_v0  ;;  %246 = vmatprep.mubr.f32.mxu1 %v1234_v0 }
  0x2a   :  { %54 = vperm.xlu1 %1028, %v48_v10   ;;  %64 = vperm.xlu0 %1027, %v50_v13  }
  0x2c   :  { %992 = vmatmul.mubr.msk.f32.gmra.mxu0 %vm72_vm0, %v50_v13  ;;  %996 = vmatmul.mubr.msk.f32.gmra.mxu1 %vm72_vm0, %v50_v13 }
  0x2d   :  { %163 = vmatprep.mubr.f32.mxu0 %v1234_v0  ;;  %252 = vmatprep.mubr.f32.mxu1 %v1234_v0 }
  0x2e   :  { %1029 = vset.pattern.permute.xlu0 %v1236_v15 }
  0x2f   :  { %342 = vperm.xlu0 %1029, %v1281_v14  }
  0x30   :  { %993 = vmatmul.mubr.msk.f32.gmra.mxu0 %vm72_vm0, %v51_v12  ;;  %997 = vmatmul.mubr.msk.f32.gmra.mxu1 %vm72_vm0, %v51_v12 }
  0x31   :  { %412 = vmatprep.mubr.f32.mxu0 %v1234_v0  ;;  %483 = vmatprep.mubr.f32.mxu1 %v1234_v0 }
  0xa1   :  { %v60_v16 = vpop.permute.xlu1 %59  ;;  %v70_v18 = vpop.permute.xlu0 %69 }
  0xa5   :  { %v55_v17 = vpop.permute.xlu1 %54  ;;  %v65_v28 = vpop.permute.xlu0 %64 }
  0xe4   :  { %v147_v19 = vpop.f32.mrf.mxu0  ;;  %v236_v20 = vpop.f32.mrf.mxu1 }
  0xe5   :  { %v148_v21 = vadd.f32 %v147_v19, %v55_v17  ;;  %v237_v5 = vadd.f32 %v236_v20, %v55_v17 }
  0xe6   :  { %v149_v22 = vpop.f32.mrf.mxu0  ;;  %v238_v23 = vpop.f32.mrf.mxu1 }
  0xe7   :  { %v259_v24 = vsub.f32 0.0, %v148_v21  ;;  %v150_v25 = vadd.f32 %v149_v22, %v55_v17  ;;  %v239_v45 = vadd.f32 %v238_v23, %v55_v17 }
  0xe8   :  { %v153_v26 = vpop.f32.mrf.mxu0  ;;  %v242_v27 = vpop.f32.mrf.mxu1 }
  0xe9   :  { %v154_v29 = vadd.f32 %v153_v26, %v60_v16  ;;  %v275_v33 = vmul.f32 1.442695, %v259_v24  ;;  %v260_v34 = vsub.f32 0.0, %v150_v25  ;;  %v243_v62 = vadd.f32 %v242_v27, %v60_v16 }
  0xea   :  { %v155_v30 = vpop.f32.mrf.mxu0  ;;  %v244_v31 = vpop.f32.mrf.mxu1  ;;  %v262_v13 = vsub.f32 0.0, %v239_v45 }
  0xeb   :  { %v156_v32 = vadd.f32 %v155_v30, %v60_v16  ;;  %v263_v37 = vsub.f32 0.0, %v154_v29  ;;  %v245_v42 = vadd.f32 %v244_v31, %v60_v16  ;;  %1034 = vpow2.f32 %v275_v33 }
  0xec   :  { %v159_v35 = vpop.f32.mrf.mxu0  ;;  %v248_v36 = vpop.f32.mrf.mxu1  ;;  %v277_v44 = vmul.f32 1.442695, %v260_v34  ;;  %v265_v11 = vsub.f32 0.0, %v243_v62  ;;  %v281_v20 = vmul.f32 1.442695, %v262_v13 }
  0xed   :  { %v160_v38 = vadd.f32 %v159_v35, %v65_v28  ;;  %v264_v39 = vsub.f32 0.0, %v156_v32  ;;  %v283_v48 = vmul.f32 1.442695, %v263_v37  ;;  %v249_v53 = vadd.f32 %v248_v36, %v65_v28 }
  0xee   :  { %v161_v40 = vpop.f32.mrf.mxu0  ;;  %v250_v41 = vpop.f32.mrf.mxu1  ;;  %v266_v58 = vsub.f32 0.0, %v245_v42  ;;  %1036 = vpow2.f32 %v277_v44  ;;  %v287_v22 = vmul.f32 1.442695, %v265_v11  ;;  %v492_v11 = vld [vmem:[#allocation5 + $0x38] sm:$0xff] }
  0xef   :  { %v162_v43 = vadd.f32 %v161_v40, %v65_v28  ;;  %v267_v49 = vsub.f32 0.0, %v160_v38  ;;  %v251_v51 = vadd.f32 %v250_v41, %v65_v28  ;;  %v285_v52 = vmul.f32 1.442695, %v264_v39 }
  0xf0   :  { %v165_v46 = vpop.f32.mrf.mxu0  ;;  %v254_v47 = vpop.f32.mrf.mxu1  ;;  %1038 = vpow2.f32 %v283_v48  ;;  %v269_v6 = vsub.f32 0.0, %v249_v53  ;;  %v289_v8 = vmul.f32 1.442695, %v266_v58 }
  0xf1   :  { %v268_v50 = vsub.f32 0.0, %v162_v43  ;;  %v166_v54 = vadd.f32 %v165_v46, %v70_v18  ;;  %v255_v55 = vadd.f32 %v254_v47, %v70_v18  ;;  %v291_v2 = vmul.f32 1.442695, %v267_v49 }
  0xf2   :  { %v167_v56 = vpop.f32.mrf.mxu0  ;;  %v256_v57 = vpop.f32.mrf.mxu1  ;;  %v270_v3 = vsub.f32 0.0, %v251_v51  ;;  %1040 = vpow2.f32 %v285_v52  ;;  %v295_v19 = vmul.f32 1.442695, %v269_v6 }
  0xf3   :  { %v293_v59 = vmul.f32 1.442695, %v268_v50  ;;  %v168_v60 = vadd.f32 %v167_v56, %v70_v18  ;;  %v257_v61 = vadd.f32 %v256_v57, %v70_v18  ;;  %v271_v63 = vsub.f32 0.0, %v166_v54 }
  0xf4   :  { %v273_v1 = vsub.f32 0.0, %v255_v55  ;;  %v297_v16 = vmul.f32 1.442695, %v270_v3  ;;  %v261_v18 = vsub.f32 0.0, %v237_v5 }
  0xf5   :  { %v272_v4 = vsub.f32 0.0, %v168_v60  ;;  %v299_v7 = vmul.f32 1.442695, %v271_v63  ;;  %1042 = vpow2.f32 %v293_v59  ;;  %v274_v10 = vsub.f32 0.0, %v257_v61 }
  0xf6   :  { %v303_v12 = vmul.f32 1.442695, %v273_v1  ;;  %v279_v23 = vmul.f32 1.442695, %v261_v18 }
  0xf7   :  { %v301_v9 = vmul.f32 1.442695, %v272_v4  ;;  %1044 = vpow2.f32 %v299_v7  ;;  %v305_v21 = vmul.f32 1.442695, %v274_v10  ;;  %v1237_v10 = vmov 4  }
  0xf8   :  { %1046 = vpow2.f32 %v291_v2  ;;  %v1035_v17 = vpop.eup %1034  ;;  %1030 = vset.pattern.permute.xlu1 %v1237_v10  ;;  %1031 = vset.pattern.permute.xlu0 %v1237_v10 }
  0xf9   :  { %1048 = vpow2.f32 %v301_v9  ;;  %v307_v27 = vadd.f32 1.0, %v1035_v17  ;;  %v493_v9 = vld [vmem:[#allocation5 + $0x40] sm:$0xff] }
  0xfa   :  { %1050 = vpow2.f32 %v289_v8  ;;  %v491_v8 = vld [vmem:[#allocation5 + $0x30] sm:$0xff]  ;;  %511 = vperm.xlu1 %1030, %v493_v9  }
  0xfb   :  { %1052 = vpow2.f32 %v303_v12  ;;  %v1037_v24 = vpop.eup %1036  ;;  %501 = vperm.xlu0 %1031, %v491_v8   ;;  %v490_v12 = vld [vmem:[#allocation5 + $0x28] sm:$0xff] }
  0xfc   :  { %1054 = vpow2.f32 %v297_v16  ;;  %v308_v29 = vadd.f32 1.0, %v1037_v24  ;;  %v343_v16 = vpop.permute.xlu0 %342 }
  0xfd   :  { %1056 = vpow2.f32 %v295_v19  ;;  %v1039_v25 = vpop.eup %1038 }
  0xfe   :  { %1058 = vpow2.f32 %v305_v21  ;;  %v311_v31 = vadd.f32 1.0, %v1039_v25  ;;  %506 = vperm.xlu1 %1030, %v492_v11  }
  0xff   :  { %1060 = vpow2.f32 %v287_v22  ;;  %v1041_v26 = vpop.eup %1040  ;;  %1033 = vset.pattern.permute.xlu0 %v1236_v15 }
 0x100   :  { %1062 = vpow2.f32 %v281_v20  ;;  %v312_v41 = vadd.f32 1.0, %v1041_v26 }
 0x101   :  { %1064 = vpow2.f32 %v279_v23  ;;  %v1312_v23 = vld [vmem:[#allocation5 + $0x50] sm:$0xff] }
 0x102   :  { %v1043_v28 = vpop.eup %1042  ;;  %1066 = vrcp.f32 %v307_v27  ;;  %496 = vperm.xlu1 %1030, %v490_v12   ;;  %803 = vperm.xlu0 %1033, %v1312_v23  }
 0x103   :  { %1068 = vrcp.f32 %v308_v29  ;;  %v316_v36 = vadd.f32 1.0, %v1043_v28 }
 0x104   :  { %v1045_v30 = vpop.eup %1044  ;;  %1070 = vrcp.f32 %v311_v31 }
 0x105   :  { %v1047_v32 = vpop.eup %1046  ;;  %v319_v34 = vadd.f32 1.0, %v1045_v30 }
 0x106   :  { %v1049_v33 = vpop.eup %1048  ;;  %v315_v39 = vadd.f32 1.0, %v1047_v32  ;;  %1032 = vset.pattern.permute.xlu1 %v1236_v15  ;;  %v1309_v15 = vld [vmem:[#allocation5 + $0x48] sm:$0xff] }
 0x107   :  { %v1051_v35 = vpop.eup %1050  ;;  %v320_v37 = vadd.f32 1.0, %v1049_v33  ;;  %798 = vperm.xlu1 %1032, %v1309_v15  }
 0x108   :  { %v1053_v38 = vpop.eup %1052  ;;  %v314_v51 = vadd.f32 1.0, %v1051_v35 }
 0x109   :  { %v1055_v40 = vpop.eup %1054  ;;  %1072 = vrcp.f32 %v320_v37  ;;  %v321_v44 = vadd.f32 1.0, %v1053_v38 }
 0x10a   :  { %v1057_v42 = vpop.eup %1056  ;;  %1074 = vrcp.f32 %v319_v34  ;;  %v318_v46 = vadd.f32 1.0, %v1055_v40 }
 0x10b   :  { %v1059_v43 = vpop.eup %1058  ;;  %1076 = vrcp.f32 %v316_v36  ;;  %v317_v49 = vadd.f32 1.0, %v1057_v42 }
 0x10c   :  { %v1061_v45 = vpop.eup %1060  ;;  %1078 = vrcp.f32 %v315_v39  ;;  %v322_v47 = vadd.f32 1.0, %v1059_v43 }
 0x10d   :  { %v1063_v48 = vpop.eup %1062  ;;  %1080 = vrcp.f32 %v312_v41  ;;  %v313_v52 = vadd.f32 1.0, %v1061_v45 }
 0x10e   :  { %v1065_v50 = vpop.eup %1064  ;;  %1082 = vrcp.f32 %v322_v47  ;;  %v310_v53 = vadd.f32 1.0, %v1063_v48 }
 0x10f   :  { %1084 = vrcp.f32 %v321_v44  ;;  %v309_v54 = vadd.f32 1.0, %v1065_v50  ;;  %v1067_v55 = vpop.eup %1066 }
 0x110   :  { %1086 = vrcp.f32 %v318_v46  ;;  %v1069_v56 = vpop.eup %1068 }
 0x111   :  { %1088 = vrcp.f32 %v317_v49  ;;  %v1071_v57 = vpop.eup %1070 }
 0x112   :  { %1090 = vrcp.f32 %v314_v51 }
 0x113   :  { %1092 = vrcp.f32 %v313_v52 }
 0x114   :  { %1094 = vrcp.f32 %v310_v53 }
 0x115   :  { %1096 = vrcp.f32 %v309_v54 }
 0x116   :  { %v1073_v58 = vpop.eup %1072 }
 0x117   :  { %v1075_v59 = vpop.eup %1074  ;;  %372 = vmatprep.subr.mxu0 %v1073_v58 }
 0x118   :  { %v1077_v60 = vpop.eup %1076  ;;  %373 = vmatpush1.msra.mxu0 %v1075_v59 }
 0x119   :  { %v1079_v61 = vpop.eup %1078  ;;  %374 = vmatprep.subr.mxu0 %v1077_v60 }
 0x11a   :  { %v1081_v62 = vpop.eup %1080  ;;  %375 = vmatpush1.msra.mxu0 %v1079_v61 }
 0x11b   :  { %v1083_v63 = vpop.eup %1082  ;;  %376 = vmatprep.subr.mxu0 %v1081_v62 }
 0x11c   :  { %v1085_v1 = vpop.eup %1084  ;;  %443 = vmatprep.subr.mxu1 %v1083_v63  ;;  %377 = vmatpush1.msra.mxu0 %v1071_v57 }
 0x11d   :  { %v1087_v2 = vpop.eup %1086  ;;  %444 = vmatpush1.msra.mxu1 %v1085_v1  ;;  %378 = vmatprep.subr.mxu0 %v1069_v56 }
 0x11e   :  { %v1089_v3 = vpop.eup %1088  ;;  %445 = vmatprep.subr.mxu1 %v1087_v2  ;;  %379 = vmatpush1.msra.mxu0 %v1067_v55 }
 0x11f   :  { %v1091_v4 = vpop.eup %1090  ;;  %446 = vmatpush1.msra.mxu1 %v1089_v3  ;;  %998 = vmatmul.mubr.msk.f32.vlgmr.msra.gmra.mxu0 %vm345_vm1, %v1281_v14 }
 0x120   :  { %v1093_v5 = vpop.eup %1092  ;;  %447 = vmatprep.subr.mxu1 %v1091_v4  ;;  %600 = vmatprep.mubr.f32.mxu0 %v1234_v0 }
 0x121   :  { %v1095_v6 = vpop.eup %1094  ;;  %448 = vmatpush1.msra.mxu1 %v1093_v5 }
 0x122   :  { %v1097_v7 = vpop.eup %1096  ;;  %449 = vmatprep.subr.mxu1 %v1095_v6 }
 0x123   :  { %450 = vmatpush1.msra.mxu1 %v1097_v7 }
 0x124   :  { %999 = vmatmul.mubr.msk.f32.vlgmr.msra.gmra.mxu1 %vm345_vm1, %v1281_v14 }
 0x125   :  { %689 = vmatprep.mubr.f32.mxu1 %v1234_v0 }
 0x175   :  { %v1315_v24 = vpop.permute.xlu1 %511 }
 0x176   :  { %v502_v30 = vpop.permute.xlu0 %501 }
 0x179   :  { %v507_v25 = vpop.permute.xlu1 %506 }
 0x17d   :  { %v497_v26 = vpop.permute.xlu1 %496 }
 0x1df   :  { %v414_v13 = vpop.f32.mrf.mxu0 }
 0x1e0   :  { %v415_v19 = vadd.f32 %v414_v13, %v343_v16 }
 0x1e1   :  { %v416_v14 = vpop.f32.mrf.mxu0 }
 0x1e2   :  { %v417_v18 = vadd.f32 %v416_v14, %v343_v16 }
 0x1e4   :  { %v485_v21 = vpop.f32.mrf.mxu1  ;;  %1000 = vmatprep.subr.msk.mxu0 %vm523_vm2, %v417_v18 }
 0x1e5   :  { %1001 = vmatpush1.msk.msra.mxu0 %vm523_vm2, %v415_v19  ;;  %v486_v20 = vadd.f32 %v485_v21, %v343_v16 }
 0x1e6   :  { %v487_v22 = vpop.f32.mrf.mxu1  ;;  %1002 = vmatmul.mubr.msk.f32.vlgmr.msra.gmra.mxu0 %vm514_vm3, %v490_v12 }
 0x1e7   :  { %v488_v17 = vadd.f32 %v487_v22, %v343_v16  ;;  %606 = vmatprep.mubr.f32.mxu0 %v1234_v0 }
 0x1e9   :  { %1006 = vmatprep.subr.msk.mxu1 %vm523_vm2, %v488_v17 }
 0x1ea   :  { %1007 = vmatpush1.msk.msra.mxu1 %vm523_vm2, %v486_v20  ;;  %1003 = vmatmul.mubr.msk.f32.gmra.mxu0 %vm514_vm3, %v491_v8 }
 0x1eb   :  { %1008 = vmatmul.mubr.msk.f32.vlgmr.msra.gmra.mxu1 %vm514_vm3, %v490_v12  ;;  %612 = vmatprep.mubr.f32.mxu0 %v1234_v0 }
 0x1ec   :  { %695 = vmatprep.mubr.f32.mxu1 %v1234_v0 }
 0x1ee   :  { %1004 = vmatmul.mubr.msk.f32.gmra.mxu0 %vm514_vm3, %v492_v11 }
 0x1ef   :  { %1009 = vmatmul.mubr.msk.f32.gmra.mxu1 %vm514_vm3, %v491_v8  ;;  %618 = vmatprep.mubr.f32.mxu0 %v1234_v0 }
 0x1f0   :  { %701 = vmatprep.mubr.f32.mxu1 %v1234_v0 }
 0x1f2   :  { %1005 = vmatmul.mubr.msk.f32.gmra.mxu0 %vm514_vm3, %v493_v9 }
 0x1f3   :  { %1010 = vmatmul.mubr.msk.f32.gmra.mxu1 %vm514_vm3, %v492_v11  ;;  %874 = vmatprep.mubr.f32.mxu0 %v1234_v0 }
 0x1f4   :  { %707 = vmatprep.mubr.f32.mxu1 %v1234_v0 }
 0x1f7   :  { %1011 = vmatmul.mubr.msk.f32.gmra.mxu1 %vm514_vm3, %v493_v9 }
 0x1f8   :  { %951 = vmatprep.mubr.f32.mxu1 %v1234_v0 }
 0x2a6   :  { %v602_v27 = vpop.f32.mrf.mxu0 }
 0x2a7   :  { %v603_v28 = vadd.f32 %v602_v27, %v497_v26 }
 0x2a8   :  { %v604_v29 = vpop.f32.mrf.mxu0 }
 0x2a9   :  { %v605_v31 = vadd.f32 %v604_v29, %v497_v26  ;;  %v714_v33 = vsub.f32 0.0, %v603_v28 }
 0x2aa   :  { %v608_v32 = vpop.f32.mrf.mxu0 }
 0x2ab   :  { %v691_v34 = vpop.f32.mrf.mxu1  ;;  %v609_v35 = vadd.f32 %v608_v32, %v502_v30  ;;  %v715_v36 = vsub.f32 0.0, %v605_v31  ;;  %v730_v42 = vmul.f32 1.442695, %v714_v33 }
 0x2ac   :  { %v610_v37 = vpop.f32.mrf.mxu0  ;;  %v692_v4 = vadd.f32 %v691_v34, %v497_v26 }
 0x2ad   :  { %v693_v38 = vpop.f32.mrf.mxu1  ;;  %v611_v39 = vadd.f32 %v610_v37, %v502_v30  ;;  %v718_v40 = vsub.f32 0.0, %v609_v35  ;;  %v732_v46 = vmul.f32 1.442695, %v715_v36  ;;  %1098 = vpow2.f32 %v730_v42 }
 0x2ae   :  { %v614_v41 = vpop.f32.mrf.mxu0  ;;  %v694_v58 = vadd.f32 %v693_v38, %v497_v26  ;;  %v716_v20 = vsub.f32 0.0, %v692_v4 }
 0x2af   :  { %v697_v43 = vpop.f32.mrf.mxu1  ;;  %v719_v44 = vsub.f32 0.0, %v611_v39  ;;  %v615_v45 = vadd.f32 %v614_v41, %v507_v25  ;;  %v738_v50 = vmul.f32 1.442695, %v718_v40  ;;  %1100 = vpow2.f32 %v732_v46 }
 0x2b0   :  { %v616_v47 = vpop.f32.mrf.mxu0  ;;  %v698_v62 = vadd.f32 %v697_v43, %v502_v30  ;;  %v717_v16 = vsub.f32 0.0, %v694_v58  ;;  %v734_v31 = vmul.f32 1.442695, %v716_v20 }
 0x2b1   :  { %v699_v48 = vpop.f32.mrf.mxu1  ;;  %v617_v49 = vadd.f32 %v616_v47, %v507_v25  ;;  %v722_v52 = vsub.f32 0.0, %v615_v45  ;;  %v740_v54 = vmul.f32 1.442695, %v719_v44  ;;  %1102 = vpow2.f32 %v738_v50 }
 0x2b2   :  { %v700_v51 = vadd.f32 %v699_v48, %v502_v30  ;;  %v620_v53 = vpop.f32.mrf.mxu0  ;;  %v720_v14 = vsub.f32 0.0, %v698_v62  ;;  %v736_v29 = vmul.f32 1.442695, %v717_v16 }
 0x2b3   :  { %v703_v55 = vpop.f32.mrf.mxu1  ;;  %v723_v56 = vsub.f32 0.0, %v617_v49  ;;  %v621_v57 = vadd.f32 %v620_v53, %v1315_v24  ;;  %v746_v5 = vmul.f32 1.442695, %v722_v52  ;;  %1104 = vpow2.f32 %v740_v54 }
 0x2b4   :  { %v721_v59 = vsub.f32 0.0, %v700_v51  ;;  %v704_v60 = vadd.f32 %v703_v55, %v507_v25  ;;  %v622_v61 = vpop.f32.mrf.mxu0  ;;  %v742_v28 = vmul.f32 1.442695, %v720_v14 }
 0x2b5   :  { %v748_v63 = vmul.f32 1.442695, %v723_v56  ;;  %v705_v1 = vpop.f32.mrf.mxu1  ;;  %v726_v2 = vsub.f32 0.0, %v621_v57  ;;  %v623_v3 = vadd.f32 %v622_v61, %v1315_v24 }
 0x2b6   :  { %v706_v6 = vadd.f32 %v705_v1, %v507_v25  ;;  %v724_v7 = vsub.f32 0.0, %v704_v60  ;;  %v744_v11 = vmul.f32 1.442695, %v721_v59 }
 0x2b7   :  { %v754_v8 = vmul.f32 1.442695, %v726_v2  ;;  %v709_v9 = vpop.f32.mrf.mxu1  ;;  %v727_v10 = vsub.f32 0.0, %v623_v3  ;;  %1106 = vpow2.f32 %v748_v63 }
 0x2b8   :  { %v725_v12 = vsub.f32 0.0, %v706_v6  ;;  %v710_v13 = vadd.f32 %v709_v9, %v1315_v24  ;;  %v750_v25 = vmul.f32 1.442695, %v724_v7 }
 0x2b9   :  { %1108 = vpow2.f32 %v754_v8  ;;  %v756_v18 = vmul.f32 1.442695, %v727_v10  ;;  %v711_v19 = vpop.f32.mrf.mxu1 }
 0x2ba   :  { %1110 = vpow2.f32 %v746_v5  ;;  %v752_v21 = vmul.f32 1.442695, %v725_v12  ;;  %v728_v22 = vsub.f32 0.0, %v710_v13  ;;  %v712_v17 = vadd.f32 %v711_v19, %v1315_v24  ;;  %v1099_v32 = vpop.eup %1098 }
 0x2bb   :  { %1112 = vpow2.f32 %v756_v18  ;;  %v762_v35 = vadd.f32 1.0, %v1099_v32  ;;  %v799_v18 = vpop.permute.xlu1 %798 }
 0x2bc   :  { %1114 = vpow2.f32 %v744_v11  ;;  %v758_v26 = vmul.f32 1.442695, %v728_v22  ;;  %v729_v27 = vsub.f32 0.0, %v712_v17  ;;  %v1101_v33 = vpop.eup %1100  ;;  %v804_v17 = vpop.permute.xlu0 %803 }
 0x2bd   :  { %1116 = vpow2.f32 %v752_v21  ;;  %v763_v37 = vadd.f32 1.0, %v1101_v33 }
 0x2be   :  { %1118 = vpow2.f32 %v758_v26  ;;  %v760_v30 = vmul.f32 1.442695, %v729_v27  ;;  %v1103_v34 = vpop.eup %1102 }
 0x2bf   :  { %1120 = vpow2.f32 %v750_v25  ;;  %v766_v39 = vadd.f32 1.0, %v1103_v34 }
 0x2c0   :  { %1122 = vpow2.f32 %v760_v30  ;;  %v1105_v24 = vpop.eup %1104 }
 0x2c1   :  { %1124 = vpow2.f32 %v742_v28  ;;  %v767_v49 = vadd.f32 1.0, %v1105_v24 }
 0x2c2   :  { %1126 = vpow2.f32 %v736_v29 }
 0x2c3   :  { %1128 = vpow2.f32 %v734_v31 }
 0x2c4   :  { %v1107_v36 = vpop.eup %1106  ;;  %1130 = vrcp.f32 %v762_v35 }
 0x2c5   :  { %1132 = vrcp.f32 %v763_v37  ;;  %v771_v44 = vadd.f32 1.0, %v1107_v36 }
 0x2c6   :  { %v1109_v38 = vpop.eup %1108  ;;  %1134 = vrcp.f32 %v766_v39 }
 0x2c7   :  { %v1111_v40 = vpop.eup %1110  ;;  %v774_v42 = vadd.f32 1.0, %v1109_v38 }
 0x2c8   :  { %v1113_v41 = vpop.eup %1112  ;;  %v770_v47 = vadd.f32 1.0, %v1111_v40 }
 0x2c9   :  { %v1115_v43 = vpop.eup %1114  ;;  %v775_v45 = vadd.f32 1.0, %v1113_v41 }
 0x2ca   :  { %v1117_v46 = vpop.eup %1116  ;;  %v769_v59 = vadd.f32 1.0, %v1115_v43 }
 0x2cb   :  { %v1119_v48 = vpop.eup %1118  ;;  %1136 = vrcp.f32 %v775_v45  ;;  %v773_v54 = vadd.f32 1.0, %v1117_v46 }
 0x2cc   :  { %v1121_v50 = vpop.eup %1120  ;;  %1138 = vrcp.f32 %v774_v42  ;;  %v776_v52 = vadd.f32 1.0, %v1119_v48 }
 0x2cd   :  { %v1123_v51 = vpop.eup %1122  ;;  %1140 = vrcp.f32 %v771_v44  ;;  %v772_v57 = vadd.f32 1.0, %v1121_v50 }
 0x2ce   :  { %v1125_v53 = vpop.eup %1124  ;;  %1142 = vrcp.f32 %v770_v47  ;;  %v777_v55 = vadd.f32 1.0, %v1123_v51 }
 0x2cf   :  { %v1127_v56 = vpop.eup %1126  ;;  %1144 = vrcp.f32 %v767_v49  ;;  %v768_v60 = vadd.f32 1.0, %v1125_v53 }
 0x2d0   :  { %v1129_v58 = vpop.eup %1128  ;;  %1146 = vrcp.f32 %v777_v55  ;;  %v765_v61 = vadd.f32 1.0, %v1127_v56 }
 0x2d1   :  { %1148 = vrcp.f32 %v776_v52  ;;  %v764_v62 = vadd.f32 1.0, %v1129_v58  ;;  %v1131_v63 = vpop.eup %1130 }
 0x2d2   :  { %1150 = vrcp.f32 %v773_v54  ;;  %v1133_v1 = vpop.eup %1132 }
 0x2d3   :  { %1152 = vrcp.f32 %v772_v57  ;;  %v1135_v2 = vpop.eup %1134 }
 0x2d4   :  { %1154 = vrcp.f32 %v769_v59 }
 0x2d5   :  { %1156 = vrcp.f32 %v768_v60 }
 0x2d6   :  { %1158 = vrcp.f32 %v765_v61 }
 0x2d7   :  { %1160 = vrcp.f32 %v764_v62 }
 0x2d8   :  { %v1137_v3 = vpop.eup %1136 }
 0x2d9   :  { %v1139_v4 = vpop.eup %1138  ;;  %834 = vmatprep.subr.mxu0 %v1137_v3 }
 0x2da   :  { %v1141_v5 = vpop.eup %1140  ;;  %835 = vmatpush1.msra.mxu0 %v1139_v4 }
 0x2db   :  { %v1143_v6 = vpop.eup %1142  ;;  %836 = vmatprep.subr.mxu0 %v1141_v5 }
 0x2dc   :  { %v1145_v7 = vpop.eup %1144  ;;  %837 = vmatpush1.msra.mxu0 %v1143_v6 }
 0x2dd   :  { %v1147_v8 = vpop.eup %1146  ;;  %838 = vmatprep.subr.mxu0 %v1145_v7 }
 0x2de   :  { %v1149_v9 = vpop.eup %1148  ;;  %911 = vmatprep.subr.mxu1 %v1147_v8  ;;  %839 = vmatpush1.msra.mxu0 %v1135_v2 }
 0x2df   :  { %v1151_v10 = vpop.eup %1150  ;;  %912 = vmatpush1.msra.mxu1 %v1149_v9  ;;  %840 = vmatprep.subr.mxu0 %v1133_v1 }
 0x2e0   :  { %v1153_v11 = vpop.eup %1152  ;;  %913 = vmatprep.subr.mxu1 %v1151_v10  ;;  %841 = vmatpush1.msra.mxu0 %v1131_v63 }
 0x2e1   :  { %v1155_v12 = vpop.eup %1154  ;;  %914 = vmatpush1.msra.mxu1 %v1153_v11  ;;  %1012 = vmatmul.mubr.msk.f32.vlgmr.msra.gmra.mxu0 %vm345_vm1, %v1309_v15 }
 0x2e2   :  { %v1157_v13 = vpop.eup %1156  ;;  %915 = vmatprep.subr.mxu1 %v1155_v12  ;;  %880 = vmatprep.mubr.f32.mxu0 %v1234_v0 }
 0x2e3   :  { %v1159_v16 = vpop.eup %1158  ;;  %916 = vmatpush1.msra.mxu1 %v1157_v13 }
 0x2e4   :  { %v1161_v14 = vpop.eup %1160  ;;  %917 = vmatprep.subr.mxu1 %v1159_v16 }
 0x2e5   :  { %918 = vmatpush1.msra.mxu1 %v1161_v14  ;;  %1013 = vmatmul.mubr.msk.f32.gmra.mxu0 %vm345_vm1, %v1312_v23 }
 0x2e6   :  { %1014 = vmatmul.mubr.msk.f32.vlgmr.msra.gmra.mxu1 %vm345_vm1, %v1309_v15 }
 0x2e7   :  { %957 = vmatprep.mubr.f32.mxu1 %v1234_v0 }
 0x2ea   :  { %1015 = vmatmul.mubr.msk.f32.gmra.mxu1 %vm345_vm1, %v1312_v23 }
 0x3a1   :  { %v876_v19 = vpop.f32.mrf.mxu0 }
 0x3a2   :  { %v877_v21 = vadd.f32 %v876_v19, %v799_v18 }
 0x3a3   :  { %v878_v22 = vpop.f32.mrf.mxu0 }
 0x3a4   :  { %964 = vst [vmem:[#allocation7] sm:$0xff] %v877_v21  ;;  %v879_v20 = vadd.f32 %v878_v22, %v799_v18 }
 0x3a5   :  { %v882_v25 = vpop.f32.mrf.mxu0 }
 0x3a6   :  { %v953_v26 = vpop.f32.mrf.mxu1  ;;  %965 = vst [vmem:[#allocation7 + $0x8] sm:$0xff] %v879_v20  ;;  %v883_v27 = vadd.f32 %v882_v25, %v804_v17 }
 0x3a7   :  { %v954_v28 = vadd.f32 %v953_v26, %v799_v18  ;;  %v884_v29 = vpop.f32.mrf.mxu0 }
 0x3a8   :  { %v955_v30 = vpop.f32.mrf.mxu1  ;;  %968 = vst [vmem:[#allocation7 + $0x20] sm:$0xff] %v883_v27  ;;  %v885_v15 = vadd.f32 %v884_v29, %v804_v17 }
 0x3a9   :  { %966 = vst [vmem:[#allocation7 + $0x10] sm:$0xff] %v954_v28  ;;  %v956_v0 = vadd.f32 %v955_v30, %v799_v18 }
 0x3aa   :  { %v959_v31 = vpop.f32.mrf.mxu1  ;;  %969 = vst [vmem:[#allocation7 + $0x28] sm:$0xff] %v885_v15 }
 0x3ab   :  { %967 = vst [vmem:[#allocation7 + $0x18] sm:$0xff] %v956_v0  ;;  %v960_v23 = vadd.f32 %v959_v31, %v804_v17 }
 0x3ac   :  { %v961_v32 = vpop.f32.mrf.mxu1 }
 0x3ad   :  { %970 = vst [vmem:[#allocation7 + $0x30] sm:$0xff] %v960_v23  ;;  %v962_v33 = vadd.f32 %v961_v32, %v804_v17 }
 0x3af   :  { %971 = vst [vmem:[#allocation7 + $0x38] sm:$0xff] %v962_v33 }
 0x3b0   :  { %1213 = shalt.err (!%p1210_p0)
}
 0x3b1   :  { %983 = dma.vmem_to_hbm [thread:$0]  %s978_s1, 1024, %s1339_s2, [#allocation4], %s1229_s12, %s1229_s12, %s1230_s13  }
 0x3b2   :  { %1226 = dma.done.wait [#allocation4], 1024  }
 0x3b3   :  { %1227 = vsyncadd [#allocation4], 4294966272 }
 0x3b4   :  { %987 = vsyncpa [#allocation3], 1 }
 0x3b5   :  { %988 = vsyncpa [#allocation6], 1 }
 0x3b6   :  { %989 = vsyncpa [#allocation4], 1 }

</bundles_post_ra>
